<compile_context>
chip_gen: v7x
topology: tpu7x:2x2x1
jax: 0.10.0
libtpu: 0.0.40
codegen_flags: <defaults>
</compile_context>

<pallas_src>
import functools

import numpy as np

import jax
import jax.numpy as jnp
from jax.experimental import pallas as pl
from jax.experimental.pallas import tpu as pltpu


def _round_up(x, m):
    return (x + m - 1) // m * m


def _phase_tap_maps(ks, s, p):
    """Sub-pixel decomposition of (nearest-upsample by s -> ks-conv, pad p, stride 1).

    Output phase a (row parity of the upsampled grid) only ever reads original-resolution
    rows i + offs[a, ky] with offs[a, ky] = floor((a + ky - p) / s).  Returns
    (omin, nt, M): nt = number of distinct offsets across all phases and
    M[a, t, ky] = 1 iff kernel tap ky of phase a reads padded-grid tap t (= offset - omin).
    """
    ky = np.arange(ks, dtype=np.int64)
    offs = np.stack([(a + ky - p) // s for a in range(s)])        # floor division, (s, ks)
    omin, omax = int(offs.min()), int(offs.max())
    nt = omax - omin + 1
    M = np.zeros((s, nt, ks), np.float32)
    for a in range(s):
        for k in range(ks):
            M[a, int(offs[a, k]) - omin, k] = 1.0
    return omin, nt, M


def _pick_vmem_limit(needed_bytes):
    """Generation-aware VMEM budget: physical capacity minus headroom for Mosaic scratch."""
    cap = 64 * 2 ** 20                                   # conservative fallback (v7x per-core)
    try:
        info = pltpu.get_tpu_info()
        cap = int(getattr(info, "vmem_capacity_bytes", cap)) or cap
    except Exception:
        pass
    headroom = max(8 << 20, cap // 8)
    return int(max(4 << 20, min(max(needed_bytes, 16 << 20), cap - headroom)))


def _complex_final_kernel(x_ref, w_ref, o_ref, p_ref, *, two_cin, nt, Wp0, KK, KA, Lp):
    """One batch element per grid step.

    x_ref : (2*Cin, F0)   zero-padded ORIGINAL-resolution input, rows = [re chans, im chans],
                          spatially flattened row-major at padded width Wp0.
    w_ref : (MMp, KA)     stacked (phase x complex) im2col weights + folded-bias column
                          (+ zero K/M padding).
    o_ref : (MMp, Lp)     tanh(result); rows = phase-major [re block, im block], lane-dense.
    p_ref : (KA, Lp)      scratch: im2col patch matrix, bias ones-row, zero K-padding rows.
    """
    # im2col via the flattened-row trick: the window of tap (ty, tx) is the contiguous
    # length-Lp slice of the flattened padded image starting at ty*Wp0 + tx.
    for ty in range(nt):
        for tx in range(nt):
            tap = ty * nt + tx
            start = ty * Wp0 + tx
            p_ref[pl.ds(tap * two_cin, two_cin), :] = x_ref[:, pl.ds(start, Lp)]

    # Row KK is a constant ones row (the MXU adds the folded bias for free via the bias
    # column of w_ref); rows KK+1..KA-1 are zero K-padding (their weight columns are zero,
    # but uninitialised VMEM could hold NaNs, so they must be written).  Written every grid
    # step: scratch is per-core, and with a "parallel" batch axis a core may never see
    # program_id(0) == 0.
    extra = KA - KK
    tail = (jax.lax.broadcasted_iota(jnp.int32, (extra, Lp), 0) == 0).astype(jnp.float32)
    p_ref[pl.ds(KK, extra), :] = tail

    # Single fused matmul: all s*s output phases x {re, im} stacked along M.
    res = jnp.dot(w_ref[...], p_ref[...], preferred_element_type=jnp.float32)
    # tanh also touches the finite garbage lanes (row-wrap columns / lane padding);
    # they are sliced off in the wrapper.
    o_ref[...] = jnp.tanh(res)


def complex_final_layer(xr_nchw, xi_nchw, wr_oihw, wi_oihw, br, bi,
                        *, scale_factor=2, ks=3, padding=1):
    """Forward pass of ComplexFinalLayer (skip_input=None).

    xr_nchw / xi_nchw : (N, Cin, H, W)   real / imag parts (float32)
    wr_oihw / wi_oihw : (Cout, Cin, ks, ks)
    br / bi           : (Cout,)
    Returns (out_real, out_imag), each (N, Cout, H*s, W*s)  (NCHW, like PyTorch).
    """
    N, Cin, H, W = xr_nchw.shape
    Cout = wr_oihw.shape[0]
    s = scale_factor
    # The sub-pixel decomposition assumes a size-preserving ("same") conv on the upsampled
    # grid, which is what the module's defaults (ks=3, padding=1) give.
    assert 2 * padding == ks - 1, "ComplexFinalLayer decomposition needs 2*padding == ks-1"

    omin, nt, Mnp = _phase_tap_maps(ks, s, padding)
    pad_lo, pad_hi = -omin, nt - 1 + omin
    assert pad_lo >= 0 and pad_hi >= 0
    Hp, Wp0 = H + pad_lo + pad_hi, W + pad_lo + pad_hi
    L = H * Wp0                        # valid output lanes (incl. nt-1 garbage cols per row)
    Lp = _round_up(L, 128)             # lane-dense (unmasked) stores
    max_start = (nt - 1) * Wp0 + (nt - 1)
    F0 = _round_up(max(Hp * Wp0, max_start + Lp), 128)
    # Every tap window [start, start + Lp) must stay inside the zero-padded flat input.
    assert max_start + Lp <= F0
    KK = nt * nt * 2 * Cin             # im2col contraction (taps x {re,im} x Cin)
    KA = _round_up(KK + 1, 8)          # + bias ones-row, padded to a sublane multiple
    MM = s * s * 2 * Cout              # phases x {re,im} x Cout stacked along M
    MMp = _round_up(MM, 8)

    # ---- stacked phase/complex weights (host-side, tiny) ---------------------------------
    Mj = jnp.asarray(Mnp)                                             # (s, nt, ks)
    wr_e = jnp.einsum("ayk,bxl,ockl->abocyx", Mj, Mj, wr_oihw)        # (s,s,Cout,Cin,nt,nt)
    wi_e = jnp.einsum("ayk,bxl,ockl->abocyx", Mj, Mj, wi_oihw)
    top = jnp.concatenate([wr_e, -wi_e], axis=3)                      # real-output rows
    bot = jnp.concatenate([wi_e, wr_e], axis=3)                       # imag-output rows
    w_cplx = jnp.concatenate([top, bot], axis=2)                      # (s,s,2Cout,2Cin,nt,nt)
    # K order = tap-major, channel-minor, matching the patch-matrix rows.
    w_mat = jnp.transpose(w_cplx, (0, 1, 2, 4, 5, 3)).reshape(MM, KK)
    # Folded bias: real rows get (br - bi), imag rows (br + bi), identical for every phase;
    # appended as an extra K column multiplied against the kernel's constant ones row.
    b_col = jnp.tile(jnp.concatenate([br - bi, br + bi]), (s * s,)).reshape(MM, 1)
    w_aug = jnp.concatenate([w_mat, b_col], axis=1)
    w_aug = jnp.pad(w_aug, ((0, MMp - MM), (0, KA - (KK + 1))))

    # ---- small input: stack re/im channels, zero-pad spatially, flatten ------------------
    x_cat = jnp.concatenate([xr_nchw, xi_nchw], axis=1)               # (N, 2Cin, H, W)
    x_pad = jnp.pad(x_cat, ((0, 0), (0, 0), (pad_lo, pad_hi), (pad_lo, pad_hi)))
    x_flat = jnp.pad(x_pad.reshape(N, 2 * Cin, Hp * Wp0),
                     ((0, 0), (0, 0), (0, F0 - Hp * Wp0)))

    kernel = functools.partial(_complex_final_kernel, two_cin=2 * Cin, nt=nt,
                               Wp0=Wp0, KK=KK, KA=KA, Lp=Lp)

    bpe = 4
    block_bytes = bpe * (2 * Cin * F0 + MMp * KA + MMp * Lp)          # one copy of each block
    scratch_bytes = bpe * (KA * Lp)
    vmem_limit = _pick_vmem_limit(2 * block_bytes + scratch_bytes + (2 << 20))

    out_flat = pl.pallas_call(
        kernel,
        out_shape=jax.ShapeDtypeStruct((N, MMp, Lp), jnp.float32),
        grid_spec=pltpu.PrefetchScalarGridSpec(
            num_scalar_prefetch=0,
            grid=(N,),
            in_specs=[
                # per-batch padded input; batch dim squeezed out of the kernel Ref
                pl.BlockSpec((None, 2 * Cin, F0), lambda n: (n, 0, 0)),
                # constant weights (tiny, MMp x KA): re-fetch / double-buffer cost is
                # negligible now that the dense upsample matrix is gone
                pl.BlockSpec((MMp, KA), lambda n: (0, 0)),
            ],
            out_specs=pl.BlockSpec((None, MMp, Lp), lambda n: (n, 0, 0)),
            scratch_shapes=[pltpu.VMEM((KA, Lp), jnp.float32)],
        ),
        compiler_params=pltpu.CompilerParams(
            dimension_semantics=("parallel",),      # batch axis shards across v7x's two TCs
            vmem_limit_bytes=vmem_limit),
    )(x_flat, w_aug)

    # Phase interleave (pixel shuffle) + real/imag split: cheap XLA reshuffle of the small
    # output.  out[n, oc, s*i + a, s*j + b] = res[n, a, b, oc, i, j].
    res = out_flat[:, :MM, :L].reshape(N, s, s, 2 * Cout, H, Wp0)[..., :W]
    out = jnp.transpose(res, (0, 3, 4, 1, 5, 2)).reshape(N, 2 * Cout, s * H, s * W)
    return out[:, :Cout], out[:, Cout:]


def _reference(xr_nchw, xi_nchw, wr_oihw, wi_oihw, br, bi, *, scale_factor=2):
    """Pure-JAX reference (lax.conv) for correctness checking."""
    def up(x):
        x = jnp.repeat(x, scale_factor, axis=2)
        return jnp.repeat(x, scale_factor, axis=3)

    xr = jnp.transpose(up(xr_nchw), (0, 2, 3, 1))
    xi = jnp.transpose(up(xi_nchw), (0, 2, 3, 1))
    wr = jnp.transpose(wr_oihw, (2, 3, 1, 0))
    wi = jnp.transpose(wi_oihw, (2, 3, 1, 0))

    def conv(x, w, b):
        y = jax.lax.conv_general_dilated(
            x, w, window_strides=(1, 1), padding="SAME",
            dimension_numbers=("NHWC", "HWIO", "NHWC"))
        return y + b

    out_r = jnp.tanh(conv(xr, wr, br) - conv(xi, wi, bi))
    out_i = jnp.tanh(conv(xi, wr, br) + conv(xr, wi, bi))
    return (jnp.transpose(out_r, (0, 3, 1, 2)),
            jnp.transpose(out_i, (0, 3, 1, 2)))


if __name__ == "__main__":
    N, Cin, Cout, H, W = 2, 4, 4, 16, 16
    ks, scale_factor, padding = 3, 2, 1

    key = jax.random.PRNGKey(0)
    k_xr, k_xi, k_wr, k_wi, k_br, k_bi = jax.random.split(key, 6)

    xr = jax.random.normal(k_xr, (N, Cin, H, W), jnp.float32)
    xi = jax.random.normal(k_xi, (N, Cin, H, W), jnp.float32)
    wr = 0.1 * jax.random.normal(k_wr, (Cout, Cin, ks, ks), jnp.float32)
    wi = 0.1 * jax.random.normal(k_wi, (Cout, Cin, ks, ks), jnp.float32)
    br = 0.05 * jax.random.normal(k_br, (Cout,), jnp.float32)
    bi = 0.05 * jax.random.normal(k_bi, (Cout,), jnp.float32)

    out_r, out_i = complex_final_layer(
        xr, xi, wr, wi, br, bi,
        scale_factor=scale_factor, ks=ks, padding=padding)
    jax.block_until_ready((out_r, out_i))

    ref_r, ref_i = _reference(xr, xi, wr, wi, br, bi, scale_factor=scale_factor)
    assert out_r.shape == (N, Cout, H * scale_factor, W * scale_factor)
    assert out_i.shape == (N, Cout, H * scale_factor, W * scale_factor)
    assert jnp.allclose(out_r, ref_r, rtol=1e-4, atol=1e-4)
    assert jnp.allclose(out_i, ref_i, rtol=1e-4, atol=1e-4)

    print("KERNEL_OK")
</pallas_src>

<mosaic_0001>
module attributes {stable_mosaic.version = 11 : i64} {
  func.func @_complex_final_kernel(%arg0: i32, %arg1: memref<1x8x512xf32, #tpu.memory_space<vmem>>, %arg2: memref<32x80xf32, #tpu.memory_space<vmem>>, %arg3: memref<1x32x384xf32, #tpu.memory_space<vmem>>, %arg4: memref<80x384xf32, #tpu.memory_space<vmem>>) attributes {dimension_semantics = [#tpu.dimension_semantics<parallel>], iteration_bounds = array<i64: 2>, scalar_prefetch = 0 : i64, scratch_operands = 1 : i64, tpu.core_type = #tpu.core_type<tc>, window_params = [{transform_indices = @transform_0, window_bounds = array<i64: 1, 8, 512>}, {pipeline_mode = #tpu.pipeline_mode<synchronous>, transform_indices = @transform_1, window_bounds = array<i64: 32, 80>}, {transform_indices = @transform_2, window_bounds = array<i64: 1, 32, 384>}]} {
    %c0 = arith.constant 0 : index
    %c0_0 = arith.constant 0 : index
    %c0_1 = arith.constant 0 : index
    %0 = vector.load %arg1[%c0, %c0_0, %c0_1] : memref<1x8x512xf32, #tpu.memory_space<vmem>>, vector<1x8x384xf32>
    %1 = vector.shape_cast %0 : vector<1x8x384xf32> to vector<8x384xf32>
    %c0_2 = arith.constant 0 : index
    %c0_3 = arith.constant 0 : index
    %2 = vector.load %arg4[%c0_2, %c0_3] : memref<80x384xf32, #tpu.memory_space<vmem>>, vector<8x384xf32>
    tpu.vector_store %arg4[%c0_2, %c0_3], %1 {strides = array<i32>} : memref<80x384xf32, #tpu.memory_space<vmem>>, vector<8x384xf32>,
    %c0_4 = arith.constant 0 : index
    %c0_5 = arith.constant 0 : index
    %c1 = arith.constant 1 : index
    %3 = vector.load %arg1[%c0_4, %c0_5, %c1] : memref<1x8x512xf32, #tpu.memory_space<vmem>>, vector<1x8x384xf32>
    %4 = vector.shape_cast %3 : vector<1x8x384xf32> to vector<8x384xf32>
    %c8 = arith.constant 8 : index
    %c0_6 = arith.constant 0 : index
    %5 = vector.load %arg4[%c8, %c0_6] : memref<80x384xf32, #tpu.memory_space<vmem>>, vector<8x384xf32>
    tpu.vector_store %arg4[%c8, %c0_6], %4 {strides = array<i32>} : memref<80x384xf32, #tpu.memory_space<vmem>>, vector<8x384xf32>,
    %c0_7 = arith.constant 0 : index
    %c0_8 = arith.constant 0 : index
    %c2 = arith.constant 2 : index
    %6 = vector.load %arg1[%c0_7, %c0_8, %c2] : memref<1x8x512xf32, #tpu.memory_space<vmem>>, vector<1x8x384xf32>
    %7 = vector.shape_cast %6 : vector<1x8x384xf32> to vector<8x384xf32>
    %c16 = arith.constant 16 : index
    %c0_9 = arith.constant 0 : index
    %8 = vector.load %arg4[%c16, %c0_9] : memref<80x384xf32, #tpu.memory_space<vmem>>, vector<8x384xf32>
    tpu.vector_store %arg4[%c16, %c0_9], %7 {strides = array<i32>} : memref<80x384xf32, #tpu.memory_space<vmem>>, vector<8x384xf32>,
    %c0_10 = arith.constant 0 : index
    %c0_11 = arith.constant 0 : index
    %c18 = arith.constant 18 : index
    %9 = vector.load %arg1[%c0_10, %c0_11, %c18] : memref<1x8x512xf32, #tpu.memory_space<vmem>>, vector<1x8x384xf32>
    %10 = vector.shape_cast %9 : vector<1x8x384xf32> to vector<8x384xf32>
    %c24 = arith.constant 24 : index
    %c0_12 = arith.constant 0 : index
    %11 = vector.load %arg4[%c24, %c0_12] : memref<80x384xf32, #tpu.memory_space<vmem>>, vector<8x384xf32>
    tpu.vector_store %arg4[%c24, %c0_12], %10 {strides = array<i32>} : memref<80x384xf32, #tpu.memory_space<vmem>>, vector<8x384xf32>,
    %c0_13 = arith.constant 0 : index
    %c0_14 = arith.constant 0 : index
    %c19 = arith.constant 19 : index
    %12 = vector.load %arg1[%c0_13, %c0_14, %c19] : memref<1x8x512xf32, #tpu.memory_space<vmem>>, vector<1x8x384xf32>
    %13 = vector.shape_cast %12 : vector<1x8x384xf32> to vector<8x384xf32>
    %c32 = arith.constant 32 : index
    %c0_15 = arith.constant 0 : index
    %14 = vector.load %arg4[%c32, %c0_15] : memref<80x384xf32, #tpu.memory_space<vmem>>, vector<8x384xf32>
    tpu.vector_store %arg4[%c32, %c0_15], %13 {strides = array<i32>} : memref<80x384xf32, #tpu.memory_space<vmem>>, vector<8x384xf32>,
    %c0_16 = arith.constant 0 : index
    %c0_17 = arith.constant 0 : index
    %c20 = arith.constant 20 : index
    %15 = vector.load %arg1[%c0_16, %c0_17, %c20] : memref<1x8x512xf32, #tpu.memory_space<vmem>>, vector<1x8x384xf32>
    %16 = vector.shape_cast %15 : vector<1x8x384xf32> to vector<8x384xf32>
    %c40 = arith.constant 40 : index
    %c0_18 = arith.constant 0 : index
    %17 = vector.load %arg4[%c40, %c0_18] : memref<80x384xf32, #tpu.memory_space<vmem>>, vector<8x384xf32>
    tpu.vector_store %arg4[%c40, %c0_18], %16 {strides = array<i32>} : memref<80x384xf32, #tpu.memory_space<vmem>>, vector<8x384xf32>,
    %c0_19 = arith.constant 0 : index
    %c0_20 = arith.constant 0 : index
    %c36 = arith.constant 36 : index
    %18 = vector.load %arg1[%c0_19, %c0_20, %c36] : memref<1x8x512xf32, #tpu.memory_space<vmem>>, vector<1x8x384xf32>
    %19 = vector.shape_cast %18 : vector<1x8x384xf32> to vector<8x384xf32>
    %c48 = arith.constant 48 : index
    %c0_21 = arith.constant 0 : index
    %20 = vector.load %arg4[%c48, %c0_21] : memref<80x384xf32, #tpu.memory_space<vmem>>, vector<8x384xf32>
    tpu.vector_store %arg4[%c48, %c0_21], %19 {strides = array<i32>} : memref<80x384xf32, #tpu.memory_space<vmem>>, vector<8x384xf32>,
    %c0_22 = arith.constant 0 : index
    %c0_23 = arith.constant 0 : index
    %c37 = arith.constant 37 : index
    %21 = vector.load %arg1[%c0_22, %c0_23, %c37] : memref<1x8x512xf32, #tpu.memory_space<vmem>>, vector<1x8x384xf32>
    %22 = vector.shape_cast %21 : vector<1x8x384xf32> to vector<8x384xf32>
    %c56 = arith.constant 56 : index
    %c0_24 = arith.constant 0 : index
    %23 = vector.load %arg4[%c56, %c0_24] : memref<80x384xf32, #tpu.memory_space<vmem>>, vector<8x384xf32>
    tpu.vector_store %arg4[%c56, %c0_24], %22 {strides = array<i32>} : memref<80x384xf32, #tpu.memory_space<vmem>>, vector<8x384xf32>,
    %c0_25 = arith.constant 0 : index
    %c0_26 = arith.constant 0 : index
    %c38 = arith.constant 38 : index
    %24 = vector.load %arg1[%c0_25, %c0_26, %c38] : memref<1x8x512xf32, #tpu.memory_space<vmem>>, vector<1x8x384xf32>
    %25 = vector.shape_cast %24 : vector<1x8x384xf32> to vector<8x384xf32>
    %c64 = arith.constant 64 : index
    %c0_27 = arith.constant 0 : index
    %26 = vector.load %arg4[%c64, %c0_27] : memref<80x384xf32, #tpu.memory_space<vmem>>, vector<8x384xf32>
    tpu.vector_store %arg4[%c64, %c0_27], %25 {strides = array<i32>} : memref<80x384xf32, #tpu.memory_space<vmem>>, vector<8x384xf32>,
    %27 = tpu.iota {dimensions = array<i32: 0>} : vector<8x384xi32>
    %c0_i32 = arith.constant 0 : i32
    %28 = vector.broadcast %c0_i32 : i32 to vector<8x384xi32>
    %29 = arith.cmpi eq, %27, %28 : vector<8x384xi32>
    %30 = arith.extui %29 : vector<8x384xi1> to vector<8x384xi32>
    %31 = arith.sitofp %30 : vector<8x384xi32> to vector<8x384xf32>
    %c72 = arith.constant 72 : index
    %c0_28 = arith.constant 0 : index
    %32 = vector.load %arg4[%c72, %c0_28] : memref<80x384xf32, #tpu.memory_space<vmem>>, vector<8x384xf32>
    tpu.vector_store %arg4[%c72, %c0_28], %31 {strides = array<i32>} : memref<80x384xf32, #tpu.memory_space<vmem>>, vector<8x384xf32>,
    %c0_29 = arith.constant 0 : index
    %c0_30 = arith.constant 0 : index
    %33 = vector.load %arg2[%c0_29, %c0_30] : memref<32x80xf32, #tpu.memory_space<vmem>>, vector<32x80xf32>
    %c0_31 = arith.constant 0 : index
    %c0_32 = arith.constant 0 : index
    %34 = vector.load %arg4[%c0_31, %c0_32] : memref<80x384xf32, #tpu.memory_space<vmem>>, vector<80x384xf32>
    %cst = arith.constant dense<0.000000e+00> : vector<32x384xf32>
    %35 = tpu.matmul %33, %34, %cst {dimension_numbers = #tpu.dot_dimension_numbers<[1], [0], [0], [1], [0, 0, 1, 1], [], []>} : vector<32x80xf32>, vector<80x384xf32>, vector<32x384xf32> -> vector<32x384xf32>
    %36 = math.tanh %35 : vector<32x384xf32>
    %c0_33 = arith.constant 0 : index
    %c0_34 = arith.constant 0 : index
    %c0_35 = arith.constant 0 : index
    %37 = vector.load %arg3[%c0_33, %c0_34, %c0_35] : memref<1x32x384xf32, #tpu.memory_space<vmem>>, vector<1x32x384xf32>
    %38 = vector.shape_cast %37 : vector<1x32x384xf32> to vector<32x384xf32>
    %39 = vector.shape_cast %36 : vector<32x384xf32> to vector<1x32x384xf32>
    tpu.vector_store %arg3[%c0_33, %c0_34, %c0_35], %39 {strides = array<i32>} : memref<1x32x384xf32, #tpu.memory_space<vmem>>, vector<1x32x384xf32>,
    return
  }
  func.func @transform_0(%arg0: i32) -> (i32, i32, i32) {
    %c0_i32 = arith.constant 0 : i32
    %c0_i32_0 = arith.constant 0 : i32
    %c0_i32_1 = arith.constant 0 : i32
    return %arg0, %c0_i32, %c0_i32_0 : i32, i32, i32
  }
  func.func @transform_1(%arg0: i32) -> (i32, i32) {
    %c0_i32 = arith.constant 0 : i32
    %c0_i32_0 = arith.constant 0 : i32
    %c0_i32_1 = arith.constant 0 : i32
    return %c0_i32, %c0_i32_0 : i32, i32
  }
  func.func @transform_2(%arg0: i32) -> (i32, i32, i32) {
    %c0_i32 = arith.constant 0 : i32
    %c0_i32_0 = arith.constant 0 : i32
    %c0_i32_1 = arith.constant 0 : i32
    return %arg0, %c0_i32, %c0_i32_0 : i32, i32, i32
  }
}

</mosaic_0001>

<bundles_post_ra>
// kernel: tpu_custom_call.1
= control target key start
LH: loop header
LB: loop body
LE: loop exit
PB: predicated region body
PF: predicated region fallthrough
CT: control target
= control target key end

     0   :  { %7 = vsyncpa [#allocation4], 0  ;;  %s1448_s0 = inlined_call_operand.hbm [shape: f32[2,8,512], index: 0, kind: input, shape index: {}]   ;;  %s1449_s1 = inlined_call_operand.hbm [shape: f32[32,80], index: 1, kind: input, shape index: {}]   ;;  %s1450_s2 = inlined_call_operand.hbm [shape: f32[2,32,384], index: 2, kind: output, shape index: {}]  }
   0x1   :  { %9 = vsyncpa [#allocation4 + $0x1], 0 }
   0x2   :  { %10 = vsyncpa [#allocation7], 0 }
   0x3   :  { %11 = vsyncpa [#allocation5], 0 }
   0x4   :  { %13 = vsyncpa [#allocation5 + $0x1], 0  ;;  %s1175_s9 = smov 0   ;;  %s1177_s10 = smov 0  }
   0x5   :  { %s1179_s11 = smov 0   ;;  %s1181_s12 = smov 0  }
   0x6 LB: > { %s1196_s13 = sadd.s32 4294967295, %s1140_s12   ;;  %s739_s14 = sadd.s32 4294967294, %s1140_s12   ;;  %s1140_s12 = sphi %s1181_s12, %s1472_s12   ;;  %s1136_s11 = sphi %s1179_s11, %s1471_s11   ;;  %s1132_s10 = sphi %s1177_s10, %s1470_s10   ;;  %s1128_s9 = sphi %s1175_s9, %s1469_s9  }
   0x7   : > { %p39_p0 = scmp.ne.s32.totalorder %s1132_s10, %s1128_s9  ;;  %p1451_p1 = scmp.eq.s32.totalorder %s1196_s13, 0 }
   0x8   : > { %p90_p3 = scmp.eq.s32.totalorder %s739_s14, 1  ;;  %p740_p5 = scmp.ge.s32.totalorder %s1140_s12, 1 }
   0x9   : > { %p1205_p4 = por %p1451_p1, %p39_p0  ;;  %p97_p7 = scmp.lt.s32.totalorder %s1140_s12, 3 }
   0xa   : > { %p1210_p6 = por %p90_p3, %p39_p0  ;;  %s1142_s18 = smov [#allocation6]  }
   0xb   : > { %s1454_s15 = scalar_select %p1205_p4, 1, 0 }
   0xc   : > { %s1455_s16 = scalar_select %p1210_p6, 1, 0 }
   0xd   : > { %p1215_p8 = pnand %p740_p5, %p97_p7  ;;  %s109_s19 = sshll.u32 %s1142_s18, 4  ;;  %s1219_s19 = int_to_ptr.vmem [resolvable:$true] %s109_s19 }
   0xe   : > { %s1231_s21 = sadd.s32 1, %s1140_s12   ;;  %s26_s22 = sadd.s32 1, %s1136_s11 }
   0xf   : > { %s1456_s17 = scalar_select %p1215_p8, 1, 0 }
  0x10   : > { %p859_p9 = pneg %p1215_p8  ;;  %s23_s23 = ssub.s32 %s1140_s12, %s1231_s21 }
  0x11   : > { %s1012_s26 = scalar_lea.hbm %s1449_s1, 512 }
  0x12   : > { %p1226_p11 = pnand %p859_p9, %p1451_p1  ;;  %p1013_p12 = scmp.ne.s32.totalorder %s1449_s1, %s1012_s26 }
  0x13   : > { %p1019_p5 = scmp.lt.u32.totalorder %s1012_s26, %s1449_s1 }
  0x14   : > { %p1014_p13 = pneg %p1226_p11 }
  0x16   : > { %p1015_p0 = pnand %p1014_p13, %p1013_p12 }
  0x18   : > { %p1016_p3 = pneg %p1015_p0 }
  0x1a   : > { %p1021_p7 = pnand %p1019_p5, %p1016_p3 }
  0x1c   : > { %1024 = shalt.err (!%p1021_p7)
}
  0x1d   : > { %s1025_s3 = scalar_lea.vmem %s1219_s19, 512  ;;  %p1033_p2 = scmp.lt.s32.totalorder %s1219_s19, %s1219_s19 }
  0x1e   : > { %p1026_p9 = scmp.ne.s32.totalorder %s1219_s19, %s1025_s3  ;;  %p1034_p6 = scmp.lt.s32.totalorder %s1025_s3, %s1025_s3 }
  0x20   : > { %p1028_p10 = pnand %p1026_p9, %p1014_p13  ;;  %p1035_p4 = por %p1034_p6, %p1033_p2 }
  0x22   : > { %p1029_p1 = pneg %p1028_p10 }
  0x24   : > { %p1036_p8 = pnand %p1035_p4, %p1029_p1 }
  0x26   : > { %1039 = shalt.err (!%p1036_p8)
}
  0x27   : > { %s1143_s4 = smov 128   ;;  %s1144_s5 = smov 8  }
  0x28   : > { %862 = dma.hbm_to_vmem [thread:$0]  (!%p1226_p11), %s1449_s1, 512, %s1219_s19, [#allocation7], %s1143_s4, %s1143_s4, %s1144_s5  }
  0x29   : > { %p24_p2 = scmp.eq.s32.totalorder %s23_s23, 0  ;;  %p33_p1 = scmp.ne.s32.totalorder %s1136_s11, %s1132_s10 }
  0x2a   : > { %p34_p4 = scmp.eq.s32.totalorder %s1140_s12, 0  ;;  %p872_p6 = scmp.lt.s32.totalorder %s1140_s12, 2 }
  0x2b   : > { %s1262_s8 = scalar_select %p24_p2, %s1136_s11, %s26_s22  }
  0x2c   : > { %p35_p8 = por %p34_p4, %p33_p1  ;;  %p1458_p10 = scmp.eq.s32.totalorder %s1196_s13, 1 }
  0x2d   : > { %s123_s18 = sand.u32 1, %s1136_s11   ;;  %s761_s24 = sshll.u32 %s1140_s12, 9 }
  0x2e   : > { %p1266_p12 = por %p1458_p10, %p33_p1  ;;  %s743_s25 = sshll.u32 %s123_s18, 5 }
  0x2f   : > { %s1275_s27 = scalar_lea.hbm %s1448_s0, %s761_s24  ;;  %s127_s19 = scalar_lea.vmem [#allocation3], %s743_s25 }
  0x30   : > { %s135_s22 = sshll.u32 %s127_s19, 4  ;;  %p1277_p11 = pnand %p872_p6, %p35_p8  ;;  %s1281_s22 = int_to_ptr.vmem [resolvable:$true] %s135_s22 }
  0x31   : > { %s124_s28 = scalar_lea.sflag [#allocation4], %s123_s18  ;;  %s1040_s29 = scalar_lea.hbm %s1275_s27, 512 }
  0x32   : > { %p1041_p13 = scmp.ne.s32.totalorder %s1275_s27, %s1040_s29  ;;  %p1042_p0 = pneg %p1277_p11 }
  0x33   : > { %s1045_s4 = scalar_lea.hbm %s1448_s0, 1024  ;;  %p1046_p7 = scmp.lt.u32.totalorder %s1275_s27, %s1448_s0 }
  0x34   : > { %p1043_p3 = pnand %p1042_p0, %p1041_p13  ;;  %p1047_p9 = scmp.lt.u32.totalorder %s1045_s4, %s1040_s29 }
  0x35   : > { %p1049_p1 = scmp.lt.u32.totalorder %s1040_s29, %s1275_s27 }
  0x36   : > { %p1044_p5 = pneg %p1043_p3  ;;  %p1048_p2 = por %p1047_p9, %p1046_p7 }
  0x38   : > { %p1050_p4 = por %p1049_p1, %p1048_p2 }
  0x3a   : > { %p1051_p6 = pnand %p1050_p4, %p1044_p5 }
  0x3c   : > { %1054 = shalt.err (!%p1051_p6)
}
  0x3d   : > { %s1055_s7 = scalar_lea.vmem %s1281_s22, 512  ;;  %s1145_s18 = smov [#allocation3]  }
  0x3e   : > { %p1056_p8 = scmp.ne.s32.totalorder %s1281_s22, %s1055_s7  ;;  %s1060_s24 = sshll.u32 %s1145_s18, 4  ;;  %s1061_s24 = int_to_ptr.vmem [resolvable:$false] %s1060_s24 }
  0x3f   : > { %s1062_s25 = scalar_lea.vmem %s1061_s24, 1024  ;;  %p1063_p3 = scmp.lt.s32.totalorder %s1281_s22, %s1061_s24 }
  0x40   : > { %p1058_p10 = pnand %p1056_p8, %p1042_p0  ;;  %p1064_p7 = scmp.lt.s32.totalorder %s1062_s25, %s1055_s7 }
  0x42   : > { %p1059_p13 = pneg %p1058_p10  ;;  %p1065_p9 = por %p1064_p7, %p1063_p3 }
  0x44   : > { %p1066_p2 = pnand %p1065_p9, %p1059_p13 }
  0x46   : > { %1069 = shalt.err (!%p1066_p2)
}
  0x47   : > { %866 = dma.hbm_to_vmem [thread:$0]  (!%p1277_p11), %s1275_s27, 512, %s1281_s22, %s124_s28  }
  0x48   : > { %p1461_p5 = scmp.ne.s32.totalorder %s1456_s17, 0 }
  0x49   : > { %s1311_s20 = sand.u32 (!%p1461_p5), 1, %s1132_s10   ;;  %p1462_p0 = scmp.ne.s32.totalorder (!%p1461_p5), %s1454_s15, 0 }
  0x4a   : > { %144 = sbr.rel (%p1461_p5) target bundleno = 491 (0x1eb), region = 28  ;;  %s747_s26 = sshll.u32 (!%p1461_p5), %s1311_s20, 5 }
  0x4b   : > { %s147_s19 = scalar_lea.sflag (!%p1461_p5), [#allocation4], %s1311_s20  ;;  %s150_s29 = scalar_lea.vmem (!%p1461_p5), [#allocation3], %s747_s26 }
  0x51   : > { %1115 = dma.done.wait (%p1462_p0), %s147_s19, 512  }
  0x52   : > { %1117 = vsyncadd (%p1462_p0), %s147_s19, 4294966784  ;;  %p1463_p1 = scmp.eq.s32.totalorder %s1196_s13, 0 }
  0x54   : > { %1119 = dma.done.wait (%p1463_p1), [#allocation7], 512   ;;  %p1464_p11 = pmov %p1463_p1 }
  0x55   : > { %v208_v0 = vld [vmem:[%s150_s29 + $0x8] sm:$0xff]  ;;  %v209_v1 = vld [vmem:[%s150_s29 + $0x10] sm:$0xff]  ;;  %v1323_v2 = vld [vmem:[%s150_s29] sm:$0xff]  ;;  %s1146_s17 = smov 126   ;;  %s1147_s27 = smov 127   ;;  %vm431_vm0 = vcmask 654336  }
  0x56   : > { %1121 = vsyncadd (%p1464_p11), [#allocation7], 4294966784  ;;  %v933_v3 = vpack.i.bf16 %v209_v1, %v208_v0  ;;  %v184_v4 = vld [vmem:[%s150_s29 + $0x18] sm:$0xff]  ;;  %s1148_s15 = smov 110   ;;  %s1149_s22 = smov 108   ;;  %v1328_v6 = vld [vmem:[#allocation6] sm:$0xff] }
  0x57   : > { %v928_v5 = vpack.i.bf16 %v184_v4, %v1323_v2  ;;  %s1150_s23 = smov 109   ;;  %s1151_s28 = smov 91   ;;  %v1153_v7 = vmov 0.0   ;;  %799 = vmatprep.mubr.msk.f32.mxu1 %vm431_vm0, %v1328_v6  ;;  %vm197_vm1 = vcmask 1039360   ;;  %vm223_vm2 = vcmask 1031168  }
  0x58   : > { %934 = vrot.lane.b32.xlu1 %v933_v3, %s1146_s17  ;;  %924 = vrot.lane.b32.xlu0 %v933_v3, %s1147_s27  ;;  %s1152_s30 = smov 92   ;;  %s1154_s3 = smov 90   ;;  %vm249_vm3 = vcmask 900096   ;;  %vm275_vm4 = vcmask 891904   ;;  %vm301_vm5 = vcmask 883712   ;;  %vm353_vm6 = vcmask 744448  }
  0x59   : > { %508 = vmatprep.mubr.f32.mxu0 %v1153_v7  ;;  %vm327_vm7 = vcmask 752640   ;;  %vm379_vm8 = vcmask 736256   ;;  %vm1155_vm10 = vmmov 1   ;;  %s849_s4 = smul.u32 96, %s1311_s20  ;;  %s1157_s19 = smov [#allocation8]  }
  0x5a   : > { %s850_s6 = smul.u32 1536, %s1196_s13  ;;  %s643_s13 = scalar_lea.sflag [#allocation5], %s1311_s20 }
  0x5b   : > { %s1383_s5 = scalar_lea.vmem [#allocation8], %s849_s4  ;;  %s1074_s29 = sshll.u32 %s1157_s19, 4  ;;  %s1075_s29 = int_to_ptr.vmem [resolvable:$false] %s1074_s29 }
  0x5c   : > { %939 = vrot.lane.b32.xlu1 %v933_v3, %s1148_s15  ;;  %929 = vrot.lane.b32.xlu0 %v928_v5, %s1147_s27  ;;  %s656_s7 = sshll.u32 %s1383_s5, 4  ;;  %s1399_s25 = scalar_lea.hbm %s1450_s2, %s850_s6  ;;  %s1402_s7 = int_to_ptr.vmem [resolvable:$true] %s656_s7 }
  0x5d   : > { %s1070_s26 = scalar_lea.vmem %s1402_s7, 1536  ;;  %p1077_p10 = scmp.lt.s32.totalorder %s1402_s7, %s1075_s29 }
  0x5e   : > { %p1071_p4 = scmp.ne.s32.totalorder %s1402_s7, %s1070_s26 }
  0x60   : > { %949 = vrot.lane.b32.xlu1 %v928_v5, %s1148_s15  ;;  %944 = vrot.lane.b32.xlu0 %v928_v5, %s1146_s17  ;;  %p1072_p6 = pnand %p1071_p4, %p1266_p12  ;;  %s1076_s17 = scalar_lea.vmem %s1075_s29, 3072 }
  0x61   : > { %p1078_p13 = scmp.lt.s32.totalorder %s1076_s17, %s1070_s26 }
  0x62   : > { %p1073_p8 = pneg %p1072_p6 }
  0x63   : > { %p1079_p3 = por %p1078_p13, %p1077_p10 }
  0x64   : > { %959 = vrot.lane.b32.xlu1 %v933_v3, %s1149_s22  ;;  %954 = vrot.lane.b32.xlu0 %v933_v3, %s1150_s23 }
  0x65   : > { %p1080_p7 = pnand %p1079_p3, %p1073_p8 }
  0x68   : > { %969 = vrot.lane.b32.xlu1 %v928_v5, %s1149_s22  ;;  %964 = vrot.lane.b32.xlu0 %v928_v5, %s1150_s23 }
  0x6c   : > { %979 = vrot.lane.b32.xlu1 %v933_v3, %s1151_s28  ;;  %974 = vrot.lane.b32.xlu0 %v933_v3, %s1152_s30 }
  0x70   : > { %345 = vrot.lane.b32.xlu1 %v1323_v2, %s1151_s28  ;;  %319 = vrot.lane.b32.xlu0 %v1323_v2, %s1152_s30 }
  0x74   : > { %371 = vrot.lane.b32.xlu1 %v1323_v2, %s1154_s3  ;;  %984 = vrot.lane.b32.xlu0 %v933_v3, %s1154_s3 }
  0x78   : > { %351 = vrot.lane.b32.xlu1 %v184_v4, %s1151_s28  ;;  %325 = vrot.lane.b32.xlu0 %v184_v4, %s1152_s30 }
  0x7c   : > { %377 = vrot.lane.b32.xlu0 %v184_v4, %s1154_s3 }
  0xca   : > { %v935_v8 = vpop.permute.xlu1 %934  ;;  %v925_v9 = vpop.permute.xlu0 %924 }
  0xcb   : > { %v927_v10 = vunpack.i.h.bf16 %v925_v9  ;;  %v926_v11 = vunpack.i.l.bf16 %v925_v9  ;;  %v937_v12 = vunpack.i.h.bf16 %v935_v8  ;;  %v936_v13 = vunpack.i.l.bf16 %v935_v8 }
  0xcd   : > { %v199_v14 = vsel %vm197_vm1, %v926_v11, %v927_v10  ;;  %v225_v24 = vsel %vm223_vm2, %v936_v13, %v937_v12 }
  0xce   : > { %v940_v15 = vpop.permute.xlu1 %939  ;;  %v930_v16 = vpop.permute.xlu0 %929  ;;  %v805_v17 = vpack.c.bf16 %v199_v14, %v208_v0  ;;  %v389_v0 = vlaneseq }
  0xcf   : > { %v942_v18 = vunpack.i.h.bf16 %v940_v15  ;;  %v941_v19 = vunpack.i.l.bf16 %v940_v15  ;;  %v932_v20 = vunpack.i.h.bf16 %v930_v16  ;;  %v931_v21 = vunpack.i.l.bf16 %v930_v16 }
  0xd0   : > { %806 = vmatprep.subr.bf16.mxu0 %v805_v17 }
  0xd1   : > { %v198_v22 = vsel %vm197_vm1, %v931_v21, %v926_v11  ;;  %v200_v23 = vsel %vm197_vm1, %v927_v10, %v932_v20  ;;  %v251_v25 = vsel %vm249_vm3, %v941_v19, %v942_v18 }
  0xd2   : > { %v950_v26 = vpop.permute.xlu1 %949  ;;  %v945_v27 = vpop.permute.xlu0 %944  ;;  %v807_v28 = vpack.c.bf16 %v198_v22, %v1323_v2  ;;  %v827_v29 = vpack.c.bf16 %v200_v23, %v209_v1  ;;  %v809_v30 = vpack.c.bf16 %v251_v25, %v225_v24  ;;  %v1156_v23 = vmov 1.0  }
  0xd3   : > { %v952_v31 = vunpack.i.h.bf16 %v950_v26  ;;  %v951_v32 = vunpack.i.l.bf16 %v950_v26  ;;  %v947_v33 = vunpack.i.h.bf16 %v945_v27  ;;  %v946_v34 = vunpack.i.l.bf16 %v945_v27 }
  0xd4   : > { %808 = vmatpush1.bf16.msra.mxu0 %v807_v28  ;;  %828 = vmatprep.subr.bf16.mxu1 %v827_v29 }
  0xd5   : > { %810 = vmatprep.subr.bf16.mxu0 %v809_v30  ;;  %830 = vmatpush3.bf16.msra.mxu1 %v827_v29  ;;  %v224_v35 = vsel %vm223_vm2, %v946_v34, %v936_v13  ;;  %v250_v36 = vsel %vm249_vm3, %v951_v32, %v941_v19  ;;  %v226_v37 = vsel %vm223_vm2, %v937_v12, %v947_v33  ;;  %v390_v12 = vshrl.u32 %v389_v0, 7  ;;  %v398_v34 = vld [vmem:[#allocation6 + $0x8] sm:$0xff] }
  0xd6   : > { %v960_v38 = vpop.permute.xlu1 %959  ;;  %v955_v39 = vpop.permute.xlu0 %954  ;;  %v811_v40 = vpack.c.bf16 %v250_v36, %v224_v35  ;;  %v252_v41 = vsel %vm249_vm3, %v942_v18, %v952_v31  ;;  %v399_v35 = vld [vmem:[#allocation6 + $0x10] sm:$0xff] }
  0xd7   : > { %v962_v42 = vunpack.i.h.bf16 %v960_v38  ;;  %v961_v43 = vunpack.i.l.bf16 %v960_v38  ;;  %v957_v44 = vunpack.i.h.bf16 %v955_v39  ;;  %v956_v45 = vunpack.i.l.bf16 %v955_v39 }
  0xd8   : > { %812 = vmatpush1.bf16.msra.mxu0 %v811_v40  ;;  %v831_v46 = vpack.c.bf16 %v252_v41, %v226_v37  ;;  %vm391_vm9 = vcmp.eq.s32.totalorder %v390_v12, 0 }
  0xd9   : > { %v277_v47 = vsel %vm275_vm4, %v956_v45, %v957_v44  ;;  %v303_v48 = vsel %vm301_vm5, %v961_v43, %v962_v42  ;;  %vm1356_vm11 = vmpackc.low %vm391_vm9, %vm1155_vm10 }
  0xda   : > { %832 = vmatprep.subr.bf16.mxu1 %v831_v46  ;;  %v970_v49 = vpop.permute.xlu1 %969  ;;  %v965_v50 = vpop.permute.xlu0 %964  ;;  %v813_v51 = vpack.c.bf16 %v303_v48, %v277_v47 }
  0xdb   : > { %834 = vmatpush3.bf16.msra.mxu1 %v831_v46  ;;  %v972_v52 = vunpack.i.h.bf16 %v970_v49  ;;  %v971_v53 = vunpack.i.l.bf16 %v970_v49  ;;  %v967_v54 = vunpack.i.h.bf16 %v965_v50  ;;  %v966_v55 = vunpack.i.l.bf16 %v965_v50 }
  0xdc   : > { %814 = vmatprep.subr.bf16.mxu0 %v813_v51 }
  0xdd   : > { %v276_v56 = vsel %vm275_vm4, %v966_v55, %v956_v45  ;;  %v302_v57 = vsel %vm301_vm5, %v971_v53, %v961_v43  ;;  %v278_v58 = vsel %vm275_vm4, %v957_v44, %v967_v54  ;;  %v304_v59 = vsel %vm301_vm5, %v962_v42, %v972_v52 }
  0xde   : > { %v980_v60 = vpop.permute.xlu1 %979  ;;  %v975_v61 = vpop.permute.xlu0 %974  ;;  %v815_v62 = vpack.c.bf16 %v302_v57, %v276_v56  ;;  %v835_v63 = vpack.c.bf16 %v304_v59, %v278_v58 }
  0xdf   : > { %v982_v1 = vunpack.i.h.bf16 %v980_v60  ;;  %v981_v2 = vunpack.i.l.bf16 %v980_v60  ;;  %v977_v3 = vunpack.i.h.bf16 %v975_v61  ;;  %v976_v4 = vunpack.i.l.bf16 %v975_v61 }
  0xe0   : > { %816 = vmatpush1.bf16.msra.mxu0 %v815_v62  ;;  %836 = vmatprep.subr.bf16.mxu1 %v835_v63 }
  0xe1   : > { %838 = vmatpush3.bf16.msra.mxu1 %v835_v63  ;;  %v329_v5 = vsel %vm327_vm7, %v976_v4, %v977_v3  ;;  %v355_v8 = vsel %vm353_vm6, %v981_v2, %v982_v1 }
  0xe2   : > { %v346_v9 = vpop.permute.xlu1 %345  ;;  %v320_v10 = vpop.permute.xlu0 %319  ;;  %v817_v11 = vpack.c.bf16 %v355_v8, %v329_v5 }
  0xe3   : > { %v354_v13 = vsel %vm353_vm6, %v346_v9, %v981_v2  ;;  %v328_v14 = vsel %vm327_vm7, %v320_v10, %v976_v4 }
  0xe4   : > { %v819_v15 = vpack.c.bf16 %v354_v13, %v328_v14  ;;  %818 = vmatprep.subr.bf16.mxu0 %v817_v11 }
  0xe6   : > { %v372_v16 = vpop.permute.xlu1 %371  ;;  %v985_v17 = vpop.permute.xlu0 %984  ;;  %820 = vmatpush1.bf16.msra.mxu0 %v819_v15 }
  0xe7   : > { %v987_v18 = vunpack.i.h.bf16 %v985_v17  ;;  %v986_v19 = vunpack.i.l.bf16 %v985_v17 }
  0xe9   : > { %v380_v20 = vsel %vm379_vm8, %v372_v16, %v986_v19  ;;  %v381_v21 = vsel %vm379_vm8, %v986_v19, %v987_v18 }
  0xea   : > { %v821_v24 = vpack.c.bf16 %v1156_v23, %v381_v21  ;;  %v824_v25 = vpack.c.bf16 %v1156_v23, %v380_v20  ;;  %v352_v26 = vpop.permute.xlu1 %351  ;;  %v326_v27 = vpop.permute.xlu0 %325 }
  0xeb   : > { %v356_v28 = vsel %vm353_vm6, %v982_v1, %v352_v26  ;;  %v330_v29 = vsel %vm327_vm7, %v977_v3, %v326_v27 }
  0xec   : > { %v839_v30 = vpack.c.bf16 %v356_v28, %v330_v29  ;;  %823 = vmatprep.subr.msk.bf16.mxu0 %vm1356_vm11, %v821_v24 }
  0xed   : > { %826 = vmatpush1.bf16.msk.msra.mxu0 %vm1356_vm11, %v824_v25 }
  0xee   : > { %v378_v31 = vpop.permute.xlu0 %377  ;;  %840 = vmatprep.subr.bf16.mxu1 %v839_v30 }
  0xef   : > { %v382_v32 = vsel %vm379_vm8, %v987_v18, %v378_v31  ;;  %842 = vmatpush3.bf16.msra.mxu1 %v839_v30 }
  0xf0   : > { %v843_v33 = vpack.c.bf16 %v1156_v23, %v382_v32  ;;  %750 = vmatmul.mubr.msk.f32.vlgmr.msra.gmra.mrb[0].mxu0 %vm431_vm0, %v1328_v6  ;;  %v400_v6 = vld [vmem:[#allocation6 + $0x18] sm:$0xff] }
  0xf1   : > { %514 = vmatprep.mubr.f32.mxu0 %v1153_v7 }
  0xf2   : > { %845 = vmatprep.subr.msk.bf16.mxu1 %vm1356_vm11, %v843_v33 }
  0xf3   : > { %848 = vmatpush3.bf16.msk.msra.mxu1 %vm1356_vm11, %v843_v33 }
  0xf4   : > { %751 = vmatmul.mubr.msk.f32.gmra.mrb[2].mxu0 %vm431_vm0, %v398_v34 }
  0xf5   : > { %520 = vmatprep.mubr.f32.mxu0 %v1153_v7 }
  0xf6   : > { %800 = vmatmul.mubr.msk.f32.vlgmr.msra.gmra.mrb[0].mxu1 %vm431_vm0, %v398_v34 }
  0xf7   : > { %802 = vmatprep.mubr.msk.f32.mxu1 %vm431_vm0, %v399_v35 }
  0xf8   : > { %752 = vmatmul.mubr.msk.f32.gmra.mrb[4].mxu0 %vm431_vm0, %v399_v35 }
  0xf9   : > { %526 = vmatprep.mubr.f32.mxu0 %v1153_v7 }
  0xfa   : > { %803 = vmatmul.mubr.msk.f32.gmra.mrb[2].mxu1 %vm431_vm0, %v400_v6 }
  0xfc   : > { %753 = vmatmul.mubr.msk.f32.gmra.mrb[6].mxu0 %vm431_vm0, %v400_v6 }
 0x1c3   : > { %v510_v36 = vpop.f32.mrb[0].mxu0 }
 0x1c4   : > { %988 = vtanh.f32 %v510_v36  ;;  %v512_v37 = vpop.f32.mrb[1].mxu0 }
 0x1c5   : > { %990 = vtanh.f32 %v512_v37 }
 0x1c7   : > { %v516_v38 = vpop.f32.mrb[2].mxu0 }
 0x1c8   : > { %992 = vtanh.f32 %v516_v38  ;;  %v518_v39 = vpop.f32.mrb[3].mxu0 }
 0x1c9   : > { %994 = vtanh.f32 %v518_v39  ;;  %v801_v40 = vpop.f32.mrb[0].mxu1 }
 0x1ca   : > { %996 = vtanh.f32 %v801_v40  ;;  %v599_v41 = vpop.f32.mrb[1].mxu1 }
 0x1cb   : > { %v522_v42 = vpop.f32.mrb[4].mxu0  ;;  %998 = vtanh.f32 %v599_v41 }
 0x1cc   : > { %1000 = vtanh.f32 %v522_v42  ;;  %v524_v7 = vpop.f32.mrb[5].mxu0 }
 0x1cd   : > { %1002 = vtanh.f32 %v524_v7  ;;  %v804_v43 = vpop.f32.mrb[2].mxu1 }
 0x1ce   : > { %v989_v44 = vpop.eup %988  ;;  %1004 = vtanh.f32 %v804_v43  ;;  %v609_v45 = vpop.f32.mrb[3].mxu1 }
 0x1cf   : > { %v991_v46 = vpop.eup %990  ;;  %630 = vst [vmem:[%s1383_s5] sm:$0xff] %v989_v44  ;;  %v528_v47 = vpop.f32.mrb[6].mxu0  ;;  %1006 = vtanh.f32 %v609_v45 }
 0x1d0   : > { %631 = vst [vmem:[%s1383_s5 + $0x8] sm:$0xff] %v991_v46  ;;  %1008 = vtanh.f32 %v528_v47  ;;  %v530_v48 = vpop.f32.mrb[7].mxu0 }
 0x1d1   : > { %1010 = vtanh.f32 %v530_v48 }
 0x1d2   : > { %v993_v49 = vpop.eup %992 }
 0x1d3   : > { %v995_v50 = vpop.eup %994  ;;  %633 = vst [vmem:[%s1383_s5 + $0x18] sm:$0xff] %v993_v49 }
 0x1d4   : > { %v997_v51 = vpop.eup %996  ;;  %634 = vst [vmem:[%s1383_s5 + $0x20] sm:$0xff] %v995_v50 }
 0x1d5   : > { %v999_v52 = vpop.eup %998  ;;  %635 = vst [vmem:[%s1383_s5 + $0x28] sm:$0xff] %v997_v51 }
 0x1d6   : > { %v1001_v53 = vpop.eup %1000  ;;  %632 = vst [vmem:[%s1383_s5 + $0x10] sm:$0xff] %v999_v52 }
 0x1d7   : > { %v1003_v54 = vpop.eup %1002  ;;  %636 = vst [vmem:[%s1383_s5 + $0x30] sm:$0xff] %v1001_v53 }
 0x1d8   : > { %v1005_v55 = vpop.eup %1004  ;;  %637 = vst [vmem:[%s1383_s5 + $0x38] sm:$0xff] %v1003_v54 }
 0x1d9   : > { %v1007_v56 = vpop.eup %1006  ;;  %641 = vst [vmem:[%s1383_s5 + $0x58] sm:$0xff] %v1005_v55 }
 0x1da   : > { %v1009_v57 = vpop.eup %1008  ;;  %638 = vst [vmem:[%s1383_s5 + $0x40] sm:$0xff] %v1007_v56 }
 0x1db   : > { %v1011_v58 = vpop.eup %1010  ;;  %639 = vst [vmem:[%s1383_s5 + $0x48] sm:$0xff] %v1009_v57 }
 0x1dc   : > { %640 = vst [vmem:[%s1383_s5 + $0x50] sm:$0xff] %v1011_v58 }
 0x1dd   : > { %1083 = shalt.err (!%p1080_p7)
}
 0x1de   : > { %s1084_s27 = scalar_lea.hbm %s1399_s25, 1536  ;;  %s1088_s23 = scalar_lea.hbm %s1450_s2, 3072 }
 0x1df   : > { %p1085_p9 = scmp.ne.s32.totalorder %s1399_s25, %s1084_s27  ;;  %p1089_p0 = scmp.lt.u32.totalorder %s1399_s25, %s1450_s2 }
 0x1e0   : > { %p1090_p1 = scmp.lt.u32.totalorder %s1088_s23, %s1084_s27  ;;  %p1092_p4 = scmp.lt.u32.totalorder %s1084_s27, %s1399_s25 }
 0x1e1   : > { %p1086_p2 = pnand %p1085_p9, %p1266_p12 }
 0x1e2   : > { %p1091_p11 = por %p1090_p1, %p1089_p0 }
 0x1e3   : > { %p1087_p5 = pneg %p1086_p2 }
 0x1e4   : > { %p1093_p6 = por %p1092_p4, %p1091_p11 }
 0x1e6   : > { %p1094_p8 = pnand %p1093_p6, %p1087_p5 }
 0x1e8   : > { %1097 = shalt.err (!%p1094_p8)
}
 0x1e9   : > { %s1158_s3 = smov 384   ;;  %s1159_s4 = smov 24  }
 0x1ea   : > { %857 = dma.vmem_to_hbm [thread:$0]  (%p1266_p12), %s1402_s7, 1536, %s1399_s25, %s643_s13, %s1158_s3, %s1158_s3, %s1159_s4  }
 0x1eb PF: > { %s671_s5 = sand.u32 1, %s1128_s9   ;;  %p1467_p10 = scmp.ne.s32.totalorder %s1455_s16, 0 }
 0x1ec   : > { %p1468_p13 = scmp.ge.s32.totalorder %s1140_s12, 2  ;;  %s672_s6 = scalar_lea.sflag [#allocation5], %s671_s5 }
 0x1ee   : > { %p868_p3 = pnand %p1468_p13, %p1467_p10 }
 0x1f0   : > { %1123 = dma.done.wait (!%p868_p3), %s672_s6, 1536  }
 0x1f1   : > { %1125 = vsyncadd (!%p868_p3), %s672_s6, 4294965760  ;;  %p16_p7 = scmp.ge.s32.totalorder %s1231_s21, 4   ;;  %s1469_s9 = smov %s1132_s10 }
 0x1f2   : > { %s1470_s10 = smov %s1136_s11  ;;  %s1471_s11 = smov %s1262_s8 }
 0x1f3   : > { %s1472_s12 = smov %s1231_s21  ;;  %18 = sbr.rel (!%p16_p7) target bundleno = 6 (0x6), region = 77 }
 0x1fa   :  { %677 = vsyncpa [#allocation4], 1 }
 0x1fb   :  { %679 = vsyncpa [#allocation4 + $0x1], 1 }
 0x1fc   :  { %680 = vsyncpa [#allocation7], 1 }
 0x1fd   :  { %681 = vsyncpa [#allocation5], 1 }
 0x1fe   :  { %683 = vsyncpa [#allocation5 + $0x1], 1 }

</bundles_post_ra>
